<compile_context>
chip_gen: v5e
topology: v5e:2x2
jax: 0.10.0
libtpu: 0.0.40
codegen_flags: <defaults>
</compile_context>

<pallas_src>
import jax
import jax.numpy as jnp
from jax.experimental import pallas as pl
from jax.experimental.pallas import tpu as pltpu

# ---- module hyper-params (small, consistent with the PyTorch module) ----
D_INP = 32
PROJ_DIM = 16
NUM_SPANS = 2
N_CLASSES = 2
CNN_CONTEXT = 0          # kernel_size = 1
B = 2                    # batch
L = 8                    # max sequence length
N_LAYERS = 3             # feature is a stack of layers; forward uses feature[-1]

CPROJ = NUM_SPANS * PROJ_DIM      # 2P  : concatenated projection width
AOFF = CPROJ                      # column offset of fused attention logits
COFF = CPROJ + NUM_SPANS          # column offset of the classifier block


def _make_kernel(bsz, seqlen, d_inp):
    """Build the kernel with static batch / sequence / feature sizes baked in."""
    P = PROJ_DIM
    S = NUM_SPANS
    NC = N_CLASSES
    assert S == 2  # TODO(synk): generalize the attn->column expansion for num_spans > 2

    def kernel(feat_ref,   # VMEM (B, L, D)            last layer only (via index_map)
               spans_ref,  # VMEM (B, 2, S) int32      [b][start|end][span], inclusive
               wpk_ref,    # VMEM (D+1, 2P+S+2P)       merged packed weights (see pack_params)
               out_ref):   # VMEM (B, C)
        # ---- single fused MXU push: both span projections + both attention logits
        x2 = feat_ref[...].reshape(bsz * seqlen, d_inp)                   # (B*L, D), layout-free
        w = wpk_ref[0:d_inp, 0:COFF]                                      # (D, 2P+S)
        bias = wpk_ref[d_inp:d_inp + 1, 0:COFF]                           # (1, 2P+S)
        proj2 = jnp.dot(x2, w, preferred_element_type=jnp.float32) + bias
        proj = proj2.reshape(bsz, seqlen, COFF)                           # (B, L, 2P+S)

        # ---- span membership masks for all (batch, span) pairs at once
        sp = spans_ref[...]                                               # (B, 2, S)
        start = sp[:, 0:1, :]                                             # (B, 1, S)
        end = sp[:, 1:2, :]                                               # (B, 1, S)
        tok = jax.lax.broadcasted_iota(jnp.int32, (bsz, seqlen, S), 1)    # token index
        in_span = jnp.logical_and(tok >= start, tok <= end)               # (B, L, S)
        mask_f = in_span.astype(jnp.float32)

        # ---- masked softmax over tokens, every (batch, span) in one shot (VPU/EUP/XLU)
        att = proj[:, :, AOFF:AOFF + S]                                   # (B, L, S)
        logit = jnp.where(in_span, att, jnp.float32(-1e30))
        mx = jnp.max(logit, axis=1, keepdims=True)                        # (B, 1, S)
        p = jnp.exp(logit - mx) * mask_f
        denom = jnp.sum(p, axis=1, keepdims=True) + 1e-13                 # (B, 1, S)
        attn = p / denom                                                  # (B, L, S)

        # ---- weighted sums: broadcast each span's weights over its P projection
        #      columns; a single sublane reduction yields the concatenated (B, 2P).
        col = jax.lax.broadcasted_iota(jnp.int32, (bsz, seqlen, CPROJ), 2)
        attn_cols = jnp.where(col < P, attn[:, :, 0:1], attn[:, :, 1:2])  # (B, L, 2P)
        cat = jnp.sum(attn_cols * proj[:, :, 0:CPROJ], axis=1)            # (B, 2P)

        # ---- classifier on the VPU (2x32x2 is far below MXU granularity)
        clf_wt = wpk_ref[0:NC, COFF:COFF + CPROJ]                         # (C, 2P)
        clf_b = wpk_ref[NC:NC + 1, COFF:COFF + NC]                        # (1, C)
        logits = jnp.sum(cat[:, None, :] * clf_wt[None, :, :], axis=-1) + clf_b
        out_ref[...] = logits                                             # (B, C)

    return kernel


def pack_params(params):
    """Fold conv/att/classifier params into ONE packed array. Call once at init.

    Layout of the returned (D+1, 2P+S+2P) f32 array:
      rows 0..D-1, cols 0..2P+S-1 : fused weight  [proj span0 | proj span1 | att0 | att1]
      row  D,      cols 0..2P+S-1 : fused bias
      rows 0..C-1, cols 2P+S..    : classifier weight, transposed  (C, 2P)
      row  C,      cols 2P+S..2P+S+C-1 : classifier bias
    """
    S, P, C, D = NUM_SPANS, PROJ_DIM, N_CLASSES, D_INP
    conv_w, conv_b = params["conv_w"], params["conv_b"]   # (S,D,P), (S,1,P)
    att_w, att_b = params["att_w"], params["att_b"]       # (S,P,1), (S,1,1)

    w_proj = jnp.concatenate([conv_w[s] for s in range(S)], axis=1)                 # (D, 2P)
    w_att = jnp.concatenate([conv_w[s] @ att_w[s] for s in range(S)], axis=1)       # (D, S)
    b_proj = jnp.concatenate([conv_b[s] for s in range(S)], axis=1)                 # (1, 2P)
    b_att = jnp.concatenate([conv_b[s] @ att_w[s] + att_b[s] for s in range(S)],
                            axis=1)                                                 # (1, S)
    left = jnp.concatenate(
        [jnp.concatenate([w_proj, w_att], axis=1),
         jnp.concatenate([b_proj, b_att], axis=1)], axis=0)                         # (D+1, 2P+S)

    right = jnp.zeros((D + 1, S * P), jnp.float32)
    right = right.at[0:C, :].set(params["clf_w"].T)                                 # (C, 2P)
    right = right.at[C, 0:C].set(params["clf_b"][0])                                # (C,)

    return jnp.concatenate([left, right], axis=1).astype(jnp.float32)               # (D+1, 2P+S+2P)


def span_classifier_forward(feature, span1_idxs, span2_idxs, mask, packed_weights):
    """feature: [N_LAYERS, B, L, D_inp]; span*_idxs: [B, 2] int (inclusive);
    mask: [B, L] (unused, API parity); packed_weights: output of pack_params."""
    del mask  # sequence_mask is ignored by SelfAttentiveSpanExtractor

    n_layers, bsz, seqlen, d = feature.shape
    # pack span indices into a single small int32 operand: [b][start|end][span]
    spans = jnp.stack([span1_idxs, span2_idxs], axis=-1).astype(jnp.int32)   # (B, 2, S)

    vmem = pltpu.MemorySpace.VMEM
    call = pl.pallas_call(
        _make_kernel(bsz, seqlen, d),
        out_shape=jax.ShapeDtypeStruct((bsz, N_CLASSES), jnp.float32),
        grid=(1,),
        in_specs=[
            # DMA only feature[-1] straight from HBM; layer dim squeezed away.
            pl.BlockSpec((pl.Squeezed(), bsz, seqlen, d),
                         lambda i: (n_layers - 1, 0, 0, 0)),
            pl.BlockSpec(memory_space=vmem),   # spans (whole array)
            pl.BlockSpec(memory_space=vmem),   # merged packed weights (whole array)
        ],
        out_specs=pl.BlockSpec((bsz, N_CLASSES), lambda i: (0, 0)),
        compiler_params=pltpu.CompilerParams(dimension_semantics=("arbitrary",)),
    )
    return call(feature, spans, packed_weights)


def reference_forward(feature, span1_idxs, span2_idxs, mask, params):
    """Pure-JAX mirror of the PyTorch forward, for a correctness check."""
    del mask
    x = feature[-1].astype(jnp.float32)                  # (B, L, D)
    _, seq, _ = x.shape
    span_idxs = jnp.stack([span1_idxs, span2_idxs], axis=0).astype(jnp.int32)
    tok = jnp.arange(seq, dtype=jnp.int32)[None, :]      # (1, L)
    embs = []
    for s in range(NUM_SPANS):
        proj = jnp.einsum("bld,dp->blp", x, params["conv_w"][s]) + params["conv_b"][s]
        att = jnp.einsum("blp,po->blo", proj, params["att_w"][s])[..., 0] + params["att_b"][s][0, 0]
        start = span_idxs[s, :, 0:1]
        end = span_idxs[s, :, 1:2]
        m = jnp.logical_and(tok >= start, tok <= end)
        masked = jnp.where(m, att, -1e30)
        mx = jnp.max(masked, axis=1, keepdims=True)
        p = jnp.exp(masked - mx) * m.astype(jnp.float32)
        w = p / (jnp.sum(p, axis=1, keepdims=True) + 1e-13)
        embs.append(jnp.einsum("bl,blp->bp", w, proj))
    cat = jnp.concatenate(embs, axis=-1)
    return jnp.dot(cat, params["clf_w"]) + params["clf_b"]


if __name__ == "__main__":
    key = jax.random.PRNGKey(0)
    ks = jax.random.split(key, 8)

    # deterministic synthetic parameters (shapes from the module __init__)
    params = {
        "conv_w": 0.05 * jax.random.normal(ks[0], (NUM_SPANS, D_INP, PROJ_DIM), jnp.float32),
        "conv_b": 0.05 * jax.random.normal(ks[1], (NUM_SPANS, 1, PROJ_DIM), jnp.float32),
        "att_w":  0.05 * jax.random.normal(ks[2], (NUM_SPANS, PROJ_DIM, 1), jnp.float32),
        "att_b":  0.05 * jax.random.normal(ks[3], (NUM_SPANS, 1, 1), jnp.float32),
        "clf_w":  0.05 * jax.random.normal(ks[4], (NUM_SPANS * PROJ_DIM, N_CLASSES), jnp.float32),
        "clf_b":  0.05 * jax.random.normal(ks[5], (1, N_CLASSES), jnp.float32),
    }

    # "module init": pack the weights ONCE; the per-call path never repacks.
    packed_weights = jax.block_until_ready(pack_params(params))

    # example inputs
    feature = jax.random.normal(ks[6], (N_LAYERS, B, L, D_INP), jnp.float32)
    span1_idxs = jnp.array([[1, 3], [0, 2]], dtype=jnp.int32)   # (B, 2) inclusive spans
    span2_idxs = jnp.array([[4, 6], [5, 7]], dtype=jnp.int32)
    seq_mask = jnp.ones((B, L), dtype=jnp.int32)                # unused (API parity)

    fwd = jax.jit(span_classifier_forward)
    logits = fwd(feature, span1_idxs, span2_idxs, seq_mask, packed_weights)
    logits = jax.block_until_ready(logits)

    ref = reference_forward(feature, span1_idxs, span2_idxs, seq_mask, params)
    assert logits.shape == (B, N_CLASSES)
    assert bool(jnp.allclose(logits, ref, atol=1e-4, rtol=1e-4)), "mismatch vs reference"

    print("KERNEL_OK")
</pallas_src>

<mosaic_0001>
module attributes {stable_mosaic.version = 11 : i64} {
  func.func @kernel(%arg0: i32, %arg1: memref<1x2x8x32xf32, #tpu.memory_space<vmem>>, %arg2: memref<2x2x2xi32, #tpu.memory_space<vmem>>, %arg3: memref<33x66xf32, #tpu.memory_space<vmem>>, %arg4: memref<2x2xf32, #tpu.memory_space<vmem>>) attributes {dimension_semantics = [#tpu.dimension_semantics<arbitrary>], iteration_bounds = array<i64: 1>, scalar_prefetch = 0 : i64, scratch_operands = 0 : i64, tpu.core_type = #tpu.core_type<tc>, window_params = [{transform_indices = @transform_0, window_bounds = array<i64: 1, 2, 8, 32>}, {pipeline_mode = #tpu.pipeline_mode<synchronous>, transform_indices = @transform_1, window_bounds = array<i64: 2, 2, 2>}, {pipeline_mode = #tpu.pipeline_mode<synchronous>, transform_indices = @transform_2, window_bounds = array<i64: 33, 66>}, {pipeline_mode = #tpu.pipeline_mode<synchronous>, transform_indices = @transform_3, window_bounds = array<i64: 2, 2>}]} {
    %c0 = arith.constant 0 : index
    %c0_0 = arith.constant 0 : index
    %c0_1 = arith.constant 0 : index
    %c0_2 = arith.constant 0 : index
    %0 = vector.load %arg1[%c0, %c0_0, %c0_1, %c0_2] : memref<1x2x8x32xf32, #tpu.memory_space<vmem>>, vector<1x2x8x32xf32>
    %1 = vector.shape_cast %0 : vector<1x2x8x32xf32> to vector<2x8x32xf32>
    %2 = vector.shape_cast %1 : vector<2x8x32xf32> to vector<16x32xf32>
    %c0_3 = arith.constant 0 : index
    %c0_4 = arith.constant 0 : index
    %3 = vector.load %arg3[%c0_3, %c0_4] : memref<33x66xf32, #tpu.memory_space<vmem>>, vector<32x34xf32>
    %c32 = arith.constant 32 : index
    %c0_5 = arith.constant 0 : index
    %4 = vector.load %arg3[%c32, %c0_5] : memref<33x66xf32, #tpu.memory_space<vmem>>, vector<1x34xf32>
    %cst = arith.constant dense<0.000000e+00> : vector<16x34xf32>
    %5 = tpu.matmul %2, %3, %cst {dimension_numbers = #tpu.dot_dimension_numbers<[1], [0], [0], [1], [0, 0, 1, 1], [], []>} : vector<16x32xf32>, vector<32x34xf32>, vector<16x34xf32> -> vector<16x34xf32>
    %6 = vector.broadcast %4 : vector<1x34xf32> to vector<16x34xf32>
    %7 = arith.addf %5, %6 : vector<16x34xf32>
    %8 = vector.shape_cast %7 : vector<16x34xf32> to vector<2x8x34xf32>
    %c0_6 = arith.constant 0 : index
    %c0_7 = arith.constant 0 : index
    %c0_8 = arith.constant 0 : index
    %9 = vector.load %arg2[%c0_6, %c0_7, %c0_8] : memref<2x2x2xi32, #tpu.memory_space<vmem>>, vector<2x2x2xi32>
    %10 = vector.extract_strided_slice %9 {offsets = [0, 0, 0], sizes = [2, 1, 2], strides = [1, 1, 1]} : vector<2x2x2xi32> to vector<2x1x2xi32>
    %11 = vector.extract_strided_slice %9 {offsets = [0, 1, 0], sizes = [2, 1, 2], strides = [1, 1, 1]} : vector<2x2x2xi32> to vector<2x1x2xi32>
    %12 = tpu.iota {dimensions = array<i32: 1>} : vector<2x8x2xi32>
    %13 = vector.broadcast %10 : vector<2x1x2xi32> to vector<2x8x2xi32>
    %14 = arith.cmpi sge, %12, %13 : vector<2x8x2xi32>
    %15 = vector.broadcast %11 : vector<2x1x2xi32> to vector<2x8x2xi32>
    %16 = arith.cmpi sle, %12, %15 : vector<2x8x2xi32>
    %17 = arith.andi %14, %16 : vector<2x8x2xi1>
    %18 = arith.extui %17 : vector<2x8x2xi1> to vector<2x8x2xi32>
    %19 = arith.sitofp %18 : vector<2x8x2xi32> to vector<2x8x2xf32>
    %20 = vector.extract_strided_slice %8 {offsets = [0, 0, 32], sizes = [2, 8, 2], strides = [1, 1, 1]} : vector<2x8x34xf32> to vector<2x8x2xf32>
    %cst_9 = arith.constant -1.000000e+30 : f32
    %21 = vector.broadcast %cst_9 : f32 to vector<2x8x2xf32>
    %22 = arith.select %17, %20, %21 : vector<2x8x2xi1>, vector<2x8x2xf32>
    %cst_10 = arith.constant dense<0xFF800000> : vector<2x2xf32>
    %23 = vector.multi_reduction <maximumf>, %22, %cst_10 [1] : vector<2x8x2xf32> to vector<2x2xf32>
    %24 = vector.shape_cast %23 : vector<2x2xf32> to vector<2x1x2xf32>
    %25 = vector.broadcast %24 : vector<2x1x2xf32> to vector<2x8x2xf32>
    %26 = arith.subf %22, %25 : vector<2x8x2xf32>
    %27 = math.exp %26 : vector<2x8x2xf32>
    %28 = arith.mulf %27, %19 : vector<2x8x2xf32>
    %cst_11 = arith.constant dense<0.000000e+00> : vector<2x2xf32>
    %29 = vector.multi_reduction <add>, %28, %cst_11 [1] : vector<2x8x2xf32> to vector<2x2xf32>
    %30 = vector.shape_cast %29 : vector<2x2xf32> to vector<2x1x2xf32>
    %cst_12 = arith.constant 9.99999982E-14 : f32
    %31 = vector.broadcast %cst_12 : f32 to vector<2x1x2xf32>
    %32 = arith.addf %30, %31 : vector<2x1x2xf32>
    %33 = vector.broadcast %32 : vector<2x1x2xf32> to vector<2x8x2xf32>
    %34 = arith.divf %28, %33 : vector<2x8x2xf32>
    %35 = tpu.iota {dimensions = array<i32: 2>} : vector<2x8x32xi32>
    %c16_i32 = arith.constant 16 : i32
    %36 = vector.broadcast %c16_i32 : i32 to vector<2x8x32xi32>
    %37 = arith.cmpi slt, %35, %36 : vector<2x8x32xi32>
    %38 = vector.extract_strided_slice %34 {offsets = [0, 0, 0], sizes = [2, 8, 1], strides = [1, 1, 1]} : vector<2x8x2xf32> to vector<2x8x1xf32>
    %39 = vector.extract_strided_slice %34 {offsets = [0, 0, 1], sizes = [2, 8, 1], strides = [1, 1, 1]} : vector<2x8x2xf32> to vector<2x8x1xf32>
    %40 = vector.shape_cast %38 : vector<2x8x1xf32> to vector<2x8x1xf32>
    %41 = vector.broadcast %40 : vector<2x8x1xf32> to vector<2x8x32xf32>
    %42 = vector.shape_cast %39 : vector<2x8x1xf32> to vector<2x8x1xf32>
    %43 = vector.broadcast %42 : vector<2x8x1xf32> to vector<2x8x32xf32>
    %44 = arith.select %37, %41, %43 : vector<2x8x32xi1>, vector<2x8x32xf32>
    %45 = vector.extract_strided_slice %8 {offsets = [0, 0, 0], sizes = [2, 8, 32], strides = [1, 1, 1]} : vector<2x8x34xf32> to vector<2x8x32xf32>
    %46 = arith.mulf %44, %45 : vector<2x8x32xf32>
    %cst_13 = arith.constant dense<0.000000e+00> : vector<2x32xf32>
    %47 = vector.multi_reduction <add>, %46, %cst_13 [1] : vector<2x8x32xf32> to vector<2x32xf32>
    %c0_14 = arith.constant 0 : index
    %c34 = arith.constant 34 : index
    %48 = vector.load %arg3[%c0_14, %c34] : memref<33x66xf32, #tpu.memory_space<vmem>>, vector<2x32xf32>
    %c2 = arith.constant 2 : index
    %c34_15 = arith.constant 34 : index
    %49 = vector.load %arg3[%c2, %c34_15] : memref<33x66xf32, #tpu.memory_space<vmem>>, vector<1x2xf32>
    %50 = vector.shape_cast %47 : vector<2x32xf32> to vector<2x1x32xf32>
    %51 = vector.shape_cast %48 : vector<2x32xf32> to vector<1x2x32xf32>
    %52 = vector.broadcast %50 : vector<2x1x32xf32> to vector<2x2x32xf32>
    %53 = vector.broadcast %51 : vector<1x2x32xf32> to vector<2x2x32xf32>
    %54 = arith.mulf %52, %53 : vector<2x2x32xf32>
    %cst_16 = arith.constant dense<0.000000e+00> : vector<2x2xf32>
    %55 = vector.multi_reduction <add>, %54, %cst_16 [2] : vector<2x2x32xf32> to vector<2x2xf32>
    %56 = vector.broadcast %49 : vector<1x2xf32> to vector<2x2xf32>
    %57 = arith.addf %55, %56 : vector<2x2xf32>
    %c0_17 = arith.constant 0 : index
    %c0_18 = arith.constant 0 : index
    %58 = vector.load %arg4[%c0_17, %c0_18] : memref<2x2xf32, #tpu.memory_space<vmem>>, vector<2x2xf32>
    tpu.vector_store %arg4[%c0_17, %c0_18], %57 {strides = array<i32>} : memref<2x2xf32, #tpu.memory_space<vmem>>, vector<2x2xf32>,
    return
  }
  func.func @transform_0(%arg0: i32) -> (i32, i32, i32, i32) {
    %c2_i32 = arith.constant 2 : i32
    %c0_i32 = arith.constant 0 : i32
    %c0_i32_0 = arith.constant 0 : i32
    %c0_i32_1 = arith.constant 0 : i32
    %c0_i32_2 = arith.constant 0 : i32
    return %c2_i32, %c0_i32, %c0_i32_0, %c0_i32_1 : i32, i32, i32, i32
  }
  func.func @transform_1(%arg0: i32) -> (i32, i32, i32) {
    %c0_i32 = arith.constant 0 : i32
    %c0_i32_0 = arith.constant 0 : i32
    %c0_i32_1 = arith.constant 0 : i32
    %c0_i32_2 = arith.constant 0 : i32
    return %c0_i32, %c0_i32_0, %c0_i32_1 : i32, i32, i32
  }
  func.func @transform_2(%arg0: i32) -> (i32, i32) {
    %c0_i32 = arith.constant 0 : i32
    %c0_i32_0 = arith.constant 0 : i32
    %c0_i32_1 = arith.constant 0 : i32
    return %c0_i32, %c0_i32_0 : i32, i32
  }
  func.func @transform_3(%arg0: i32) -> (i32, i32) {
    %c0_i32 = arith.constant 0 : i32
    %c0_i32_0 = arith.constant 0 : i32
    %c0_i32_1 = arith.constant 0 : i32
    return %c0_i32, %c0_i32_0 : i32, i32
  }
}

</mosaic_0001>

<bundles_post_ra>
// kernel: span_classifier_forward.1
= control target key start
LH: loop header
LB: loop body
LE: loop exit
PB: predicated region body
PF: predicated region fallthrough
CT: control target
= control target key end

     0   :  { %8 = vsyncpa [#allocation3], 0  ;;  %s507_s0 = inlined_call_operand.hbm [shape: f32[3,2,8,32], index: 0, kind: input, shape index: {}]   ;;  %s508_s1 = inlined_call_operand.vmem [shape: s32[2,2,2], index: 1, kind: input, shape index: {}]   ;;  %s509_s2 = inlined_call_operand.hbm [shape: f32[33,66], index: 2, kind: input, shape index: {}]   ;;  %s510_s3 = inlined_call_operand.hbm [shape: f32[2,2], index: 3, kind: output, shape index: {}]  }
   0x1   :  { %9 = vsyncpa [#allocation6], 0 }
   0x2   :  { %10 = vsyncpa [#allocation4], 0  ;;  %s15_s14 = scalar_lea.hbm %s507_s0, 32  ;;  %s391_s16 = smov [#allocation2]  }
   0x3   :  { %s16_s15 = sshll.u32 %s15_s14, 4  ;;  %s18_s17 = sshll.u32 %s391_s16, 4  ;;  %s17_s15 = int_to_ptr.hbm [resolvable:$true] %s16_s15  ;;  %s19_s17 = int_to_ptr.vmem [resolvable:$true] %s18_s17 }
   0x4   :  { %s392_s18 = smov 128   ;;  %s393_s19 = smov 8  }
   0x5   :  { %24 = dma.hbm_to_vmem [thread:$0]  %s17_s15, 256, %s19_s17, [#allocation3], %s392_s18, %s392_s18, %s393_s19  }
   0x6   :  { %s31_s22 = sshll.u32 %s509_s2, 4  ;;  %s394_s23 = smov [#allocation5]   ;;  %s32_s22 = int_to_ptr.hbm [resolvable:$true] %s31_s22 }
   0x7   :  { %s33_s24 = sshll.u32 %s394_s23, 4  ;;  %s34_s24 = int_to_ptr.vmem [resolvable:$true] %s33_s24 }
   0x8   :  { %39 = dma.hbm_to_vmem [thread:$0]  %s32_s22, 640, %s34_s24, [#allocation6], %s392_s18, %s392_s18, %s393_s19  }
   0x9   :  { %385 = dma.done.wait [#allocation3], 256  }
   0xa   :  { %386 = vsyncadd [#allocation3], 4294967040 }
   0xb   :  { %387 = dma.done.wait [#allocation6], 640  }
   0xc   :  { %388 = vsyncadd [#allocation6], 4294966656  ;;  %v53_v0 = vld [vmem:[#allocation5 + $0x18] sm:$0xff]  ;;  %v52_v1 = vld [vmem:[#allocation5 + $0x10] sm:$0xff]  ;;  %vm56_vm0 = vcmask 261120   ;;  %s395_s0 = smov 96   ;;  %v88_v11 = vlaneseq }
   0xd   :  { %75 = vmatpush.msra.mxu0 %v53_v0  ;;  %285 = vmatpush.msra.mxu1 %v53_v0  ;;  %v51_v2 = vld [vmem:[#allocation5 + $0x8] sm:$0xff]  ;;  %v50_v3 = vld [vmem:[#allocation5] sm:$0xff]  ;;  %v48_v4 = vld [vmem:[#allocation2] sm:$0xff]  ;;  %vm114_vm4 = vcmask 15360   ;;  %v396_v42 = vmov 1   ;;  %v397_v43 = vmov 0  }
   0xe   :  { %v49_v5 = vld [vmem:[#allocation2 + $0x8] sm:$0xff]  ;;  %v303_v6 = vld [vmem:[#allocation5 + $0x20] ss:$0 sm:$0xff]  ;;  %v86_v12 = vld [vmem:[%s508_s1] sm:$0x3]  ;;  %v439_v13 = vshrl.u32 %v88_v11, 7  ;;  %300 = vset.pattern.permute.xlu2 %v396_v42  ;;  %299 = vset.pattern.permute.xlu1 %v397_v43 }
   0xf   :  { %76 = vmatpush.msra.mxu0 %v52_v1  ;;  %286 = vmatpush.msra.mxu1 %v52_v1  ;;  %v90_v14 = vperm.slane %v86_v12, 0  ;;  %v94_v15 = vperm.slane %v86_v12, 1  ;;  %v87_v18 = vld [vmem:[%s508_s1 + $0x2] sm:$0x3]  ;;  %v398_v45 = vmov 0.0   ;;  %s399_s1 = smov 94  }
  0x10   :  { %v91_v19 = vperm.slane %v87_v18, 0  ;;  %v95_v20 = vperm.slane %v87_v18, 1  ;;  %v222_v62 = vld [vmem:[#allocation5] sm:$0x3]  ;;  %s400_s28 = smov [#allocation7]   ;;  %s270_s5 = sshll.u32 %s510_s3, 4  ;;  %s271_s5 = int_to_ptr.hbm [resolvable:$true] %s270_s5 }
  0x11   :  { %77 = vmatpush.msra.mxu0 %v51_v2  ;;  %287 = vmatpush.msra.mxu1 %v51_v2  ;;  %vm442_vm1 = vcmp.ge.s32.totalorder %v439_v13, %v90_v14  ;;  %vm447_vm2 = vcmp.le.s32.totalorder %v439_v13, %v94_v15  ;;  %s268_s29 = sshll.u32 %s400_s28, 4  ;;  %s269_s29 = int_to_ptr.vmem [resolvable:$true] %s268_s29 }
  0x12   :  { %vm98_vm3 = vmand %vm442_vm1, %vm447_vm2  ;;  %vm465_vm5 = vcmp.ge.s32.totalorder %v439_v13, %v91_v19  ;;  %vm470_vm6 = vcmp.le.s32.totalorder %v439_v13, %v95_v20  ;;  %vm230_vm2 = vcmask 254976  }
  0x13   :  { %78 = vmatpush.msra.mxu0 %v50_v3  ;;  %288 = vmatpush.msra.mxu1 %v50_v3  ;;  %vm99_vm7 = vmand %vm465_vm5, %vm470_vm6  ;;  %v283_v46 = vsel %vm98_vm3, 1.0, %v398_v45 }
  0x14   :  { %281 = vmatmul.msk.f32.vlgmr.msra.gmra.mxu0 %vm56_vm0, %v48_v4  ;;  %282 = vmatmul.msk.f32.vlgmr.msra.gmra.mxu1 %vm56_vm0, %v49_v5  ;;  %v284_v53 = vsel %vm99_vm7, 1.0, %v398_v45 }
  0x91   :  { %v80_v7 = vpop.f32.mrf.mxu0  ;;  %v83_v9 = vpop.f32.mrf.mxu1 }
  0x92   :  { %v429_v8 = vadd.f32 %v303_v6, %v80_v7  ;;  %v432_v10 = vadd.f32 %v303_v6, %v83_v9 }
  0x94   :  { %106 = vrot.lane.b32.xlu0 %v429_v8, %s395_s0 }
  0x9c   :  { %108 = vrot.lane.b32.xlu0 %v432_v10, %s395_s0 }
  0xa4   :  { %225 = vrot.lane.b32.xlu0 %v222_v62, %s399_s1 }
 0x106   :  { %v107_v21 = vpop.permute.xlu0 %106 }
 0x107   :  { %v112_v22 = vsel %vm98_vm3, %v107_v21, -1e+30  ;;  %vm261_vm3 = vcmask 9216  }
 0x108   :  { %v115_v23 = vsel %vm114_vm4, %v112_v22, -inf }
 0x109   :  { %v116_v24 = vrot.slane %v115_v23, 4 }
 0x10b   :  { %v117_v27 = vmax.f32 %v115_v23, %v116_v24 }
 0x10d   :  { %v118_v28 = vrot.slane %v117_v27, 2 }
 0x10e   :  { %v109_v29 = vpop.permute.xlu0 %108 }
 0x10f   :  { %v119_v30 = vmax.f32 %v117_v27, %v118_v28  ;;  %v113_v31 = vsel %vm99_vm7, %v109_v29, -1e+30 }
 0x110   :  { %v122_v32 = vsel %vm114_vm4, %v113_v31, -inf }
 0x111   :  { %v120_v33 = vrot.slane %v119_v30, 1  ;;  %v123_v34 = vrot.slane %v122_v32, 4 }
 0x113   :  { %v121_v35 = vmax.f32 %v119_v30, %v120_v33  ;;  %v124_v36 = vmax.f32 %v122_v32, %v123_v34  ;;  %v241_v33 = vadd.s32 34, %v439_v13  ;;  %v304_v34 = vld [vmem:[#allocation5 + $0x2] ss:$0 sm:$0xff] }
 0x115   :  { %v129_v37 = vsub.f32 %v112_v22, %v121_v35  ;;  %v125_v38 = vrot.slane %v124_v36, 2  ;;  %301 = vset.pattern.permute.xlu0 %v241_v33  ;;  %v184_v35 = vand.u32 127, %v88_v11 }
 0x117   :  { %v131_v39 = vmul.f32 1.442695, %v129_v37  ;;  %v126_v40 = vmax.f32 %v124_v36, %v125_v38  ;;  %vm185_vm1 = vcmp.lt.s32.totalorder %v184_v35, 16 }
 0x119   :  { %305 = vpow2.f32 %v131_v39  ;;  %v127_v41 = vrot.slane %v126_v40, 1 }
 0x11b   :  { %v128_v44 = vmax.f32 %v126_v40, %v127_v41 }
 0x11d   :  { %v130_v47 = vsub.f32 %v113_v31, %v128_v44  ;;  %243 = vperm.xlu0 %301, %v304_v34  }
 0x11f   :  { %v306_v48 = vpop.eup %305  ;;  %v133_v49 = vmul.f32 1.442695, %v130_v47 }
 0x120   :  { %v135_v50 = vmul.f32 %v306_v48, %v283_v46 }
 0x121   :  { %307 = vpow2.f32 %v133_v49 }
 0x122   :  { %v137_v51 = vsel %vm114_vm4, %v135_v50, 0.0 }
 0x123   :  { %v138_v52 = vrot.slane %v137_v51, 4 }
 0x125   :  { %v139_v54 = vadd.f32 %v138_v52, %v137_v51  ;;  %302 = vset.pattern.permute.xlu0 %v397_v43  ;;  %v226_v43 = vpop.permute.xlu0 %225 }
 0x127   :  { %v308_v55 = vpop.eup %307  ;;  %v140_v56 = vrot.slane %v139_v54, 2 }
 0x128   :  { %v136_v57 = vmul.f32 %v308_v55, %v284_v53 }
 0x129   :  { %v141_v58 = vadd.f32 %v140_v56, %v139_v54 }
 0x12a   :  { %v144_v59 = vsel %vm114_vm4, %v136_v57, 0.0 }
 0x12b   :  { %v145_v60 = vrot.slane %v144_v59, 4  ;;  %v142_v61 = vrot.slane %v141_v58, 1 }
 0x12d   :  { %v146_v63 = vadd.f32 %v145_v60, %v144_v59  ;;  %v143_v0 = vadd.f32 %v142_v61, %v141_v58 }
 0x12f   :  { %v147_v1 = vrot.slane %v146_v63, 2  ;;  %v151_v2 = vadd.f32 1e-13, %v143_v0 }
 0x131   :  { %v148_v3 = vadd.f32 %v147_v1, %v146_v63  ;;  %309 = vrcp.f32 %v151_v2  ;;  %v164_v14 = vand.u32 2147483648, %v151_v2  ;;  %v162_v16 = vand.u32 2147483647, %v151_v2 }
 0x132   :  { %vm158_vm9 = vweird.f32 %v151_v2 }
 0x133   :  { %v149_v4 = vrot.slane %v148_v3, 1  ;;  %v165_v19 = vor.u32 1.1754944e-38, %v164_v14  ;;  %vm163_vm11 = vcmp.eq.f32.partialorder %v162_v16, 8.507059e+37 }
 0x135   :  { %v150_v5 = vadd.f32 %v149_v4, %v148_v3 }
 0x137   :  { %v310_v6 = vpop.eup %309  ;;  %v152_v7 = vadd.f32 1e-13, %v150_v5 }
 0x138   :  { %v154_v9 = vmul.f32 %v310_v6, %v151_v2  ;;  %vm159_vm8 = vweird.f32 %v310_v6 }
 0x139   :  { %311 = vrcp.f32 %v152_v7  ;;  %vm160_vm10 = vmor %vm158_vm9, %vm159_vm8  ;;  %v179_v25 = vand.u32 2147483648, %v152_v7  ;;  %v177_v27 = vand.u32 2147483647, %v152_v7  ;;  %vm173_vm13 = vweird.f32 %v152_v7 }
 0x13a   :  { %v155_v12 = vsub.f32 1.0, %v154_v9 }
 0x13b   :  { %v180_v29 = vor.u32 1.1754944e-38, %v179_v25  ;;  %vm178_vm15 = vcmp.eq.f32.partialorder %v177_v27, 8.507059e+37 }
 0x13c   :  { %v156_v15 = vmul.f32 %v310_v6, %v155_v12 }
 0x13e   :  { %v157_v17 = vadd.f32 %v310_v6, %v156_v15 }
 0x13f   :  { %v312_v18 = vpop.eup %311 }
 0x140   :  { %v161_v20 = vsel %vm160_vm10, %v310_v6, %v157_v17  ;;  %v169_v21 = vmul.f32 %v312_v18, %v152_v7  ;;  %vm174_vm12 = vweird.f32 %v312_v18 }
 0x141   :  { %v166_v22 = vsel %vm163_vm11, %v165_v19, %v161_v20  ;;  %vm175_vm14 = vmor %vm173_vm13, %vm174_vm12 }
 0x142   :  { %v167_v23 = vmul.f32 %v166_v22, %v135_v50  ;;  %v170_v24 = vsub.f32 1.0, %v169_v21 }
 0x144   :  { %197 = vperm.xlu2 %300, %v167_v23   ;;  %188 = vperm.xlu1 %299, %v167_v23   ;;  %v171_v26 = vmul.f32 %v312_v18, %v170_v24 }
 0x146   :  { %v172_v28 = vadd.f32 %v312_v18, %v171_v26 }
 0x148   :  { %v176_v30 = vsel %vm175_vm14, %v312_v18, %v172_v28 }
 0x149   :  { %v181_v31 = vsel %vm178_vm15, %v180_v29, %v176_v30 }
 0x14a   :  { %v182_v32 = vmul.f32 %v181_v31, %v136_v57 }
 0x14c   :  { %201 = vperm.xlu2 %300, %v182_v32   ;;  %193 = vperm.xlu1 %299, %v182_v32  }
 0x19e   :  { %v198_v36 = vpop.permute.xlu2 %197 }
 0x1a6   :  { %v202_v44 = vpop.permute.xlu2 %201 }
 0x1b6   :  { %v189_v37 = vpop.permute.xlu1 %188 }
 0x1b7   :  { %v204_v38 = vsel %vm185_vm1, %v189_v37, %v198_v36 }
 0x1b8   :  { %v206_v39 = vmul.f32 %v204_v38, %v429_v8 }
 0x1ba   :  { %v208_v40 = vsel %vm56_vm0, %v206_v39, 0.0 }
 0x1bb   :  { %v209_v41 = vrot.slane %v208_v40, 4 }
 0x1bd   :  { %v210_v42 = vadd.f32 %v209_v41, %v208_v40 }
 0x1be   :  { %v194_v45 = vpop.permute.xlu1 %193 }
 0x1bf   :  { %v205_v13 = vsel %vm185_vm1, %v194_v45, %v202_v44  ;;  %v211_v46 = vrot.slane %v210_v42, 2 }
 0x1c0   :  { %v207_v47 = vmul.f32 %v205_v13, %v432_v10  ;;  %v244_v10 = vpop.permute.xlu0 %243 }
 0x1c1   :  { %v212_v48 = vadd.f32 %v211_v46, %v210_v42 }
 0x1c2   :  { %v215_v11 = vsel %vm56_vm0, %v207_v47, 0.0  ;;  %vm258_vm0 = vcmask 1041409  }
 0x1c3   :  { %v216_v49 = vrot.slane %v215_v11, 4  ;;  %v213_v50 = vrot.slane %v212_v48, 1 }
 0x1c5   :  { %v217_v51 = vadd.f32 %v216_v49, %v215_v11  ;;  %v214_v52 = vadd.f32 %v213_v50, %v212_v48 }
 0x1c7   :  { %v218_v8 = vrot.slane %v217_v51, 2  ;;  %v228_v53 = vmul.f32 %v226_v43, %v214_v52 }
 0x1c9   :  { %v219_v54 = vadd.f32 %v218_v8, %v217_v51  ;;  %v231_v55 = vsel %vm230_vm2, %v228_v53, 0.0 }
 0x1ca   :  { %232 = vadd.xlane.f32.xlu1 %v231_v55 }
 0x1cb   :  { %v220_v56 = vrot.slane %v219_v54, 1 }
 0x1cd   :  { %v221_v57 = vadd.f32 %v220_v56, %v219_v54 }
 0x1cf   :  { %v229_v58 = vmul.f32 %v226_v43, %v221_v57 }
 0x1d1   :  { %v234_v59 = vsel %vm230_vm2, %v229_v58, 0.0 }
 0x1d2   :  { %235 = vadd.xlane.f32.xlu2 %v234_v59 }
 0x23d   :  { %v233_v60 = vpop.xlane.xlu1 %232 }
 0x23e   :  { %v246_v61 = vadd.f32 %v244_v10, %v233_v60 }
 0x240   :  { %251 = vperm.xlu0 %302, %v246_v61  }
 0x245   :  { %v236_v62 = vpop.xlane.xlu2 %235 }
 0x246   :  { %v247_v63 = vadd.f32 %v244_v10, %v236_v62 }
 0x248   :  { %254 = vperm.xlu0 %302, %v247_v63  }
 0x2b2   :  { %v252_v0 = vpop.permute.xlu0 %251 }
 0x2b3   :  { %v256_v2 = vperm.slane %v252_v0, %v184_v35 }
 0x2ba   :  { %v255_v1 = vpop.permute.xlu0 %254 }
 0x2bb   :  { %v257_v3 = vperm.slane %v255_v1, %v184_v35 }
 0x2bd   :  { %v259_v4 = vsel %vm258_vm0, %v257_v3, %v256_v2 }
 0x2be   :  { %262 = vst.msk [vmem:[#allocation7] sm:$0x3] %vm261_vm3, %v259_v4 }
 0x2bf   :  { %273 = dma.vmem_to_hbm [thread:$0]  %s269_s29, 32, %s271_s5, [#allocation4]  }
 0x2c0   :  { %389 = dma.done.wait [#allocation4], 32  }
 0x2c1   :  { %390 = vsyncadd [#allocation4], 4294967264 }
 0x2c2   :  { %278 = vsyncpa [#allocation3], 1 }
 0x2c3   :  { %279 = vsyncpa [#allocation6], 1 }
 0x2c4   :  { %280 = vsyncpa [#allocation4], 1 }

</bundles_post_ra>
